<compile_context>
chip_gen: v5e
topology: v5e:2x2
jax: 0.10.0
libtpu: 0.0.40
codegen_flags: <defaults>
</compile_context>

<pallas_src>
import functools

import jax
import jax.numpy as jnp
from jax.experimental import pallas as pl
from jax.experimental.pallas import tpu as pltpu


# ---------------------------------------------------------------------------
# Kernel
# ---------------------------------------------------------------------------
def idm_kernel(o_ref, w1_ref, b1_ref, w2_ref, b2_ref,
               w3a_ref, w3b_ref, b3_ref, out_ref):
    # o_ref   : [2, TILE_B, obs]  bf16   (stacked obs1 / obs2 rows)
    # w1_ref  : [obs, H] bf16     b1_ref : [1, H]  f32
    # w2_ref  : [H,   H] bf16     b2_ref : [1, H]  f32
    # w3a_ref : [H, A_pad] bf16   w3b_ref: [H, A_pad] bf16   b3_ref: [1, A_pad] f32
    # out_ref : [TILE_B, A_pad]   f32
    tb = out_ref.shape[0]
    obs = o_ref.shape[2]

    # Run both encoder passes as a single matmul per layer (2*tb rows).
    # tb is always a multiple of 8, so this reshape is layout-preserving.
    x = o_ref[...].reshape(2 * tb, obs)                         # bf16

    h1 = jnp.dot(x, w1_ref[...], preferred_element_type=jnp.float32) + b1_ref[...]
    h1 = jnp.maximum(h1, 0.0).astype(jnp.bfloat16)

    h2 = jnp.dot(h1, w2_ref[...], preferred_element_type=jnp.float32) + b2_ref[...]
    e = jnp.maximum(h2, 0.0).astype(jnp.bfloat16)               # [2*tb, H]

    # cat([e1, e2], axis=1) @ W3  ==  e1 @ W3[:H] + e2 @ W3[H:]   (no concat)
    y = (jnp.dot(e[:tb], w3a_ref[...], preferred_element_type=jnp.float32)
         + jnp.dot(e[tb:], w3b_ref[...], preferred_element_type=jnp.float32)
         + b3_ref[...])
    out_ref[...] = y.astype(out_ref.dtype)


# ---------------------------------------------------------------------------
# Wrapper
# ---------------------------------------------------------------------------
@functools.partial(jax.jit,
                   static_argnames=("action_size", "tile_b",
                                    "single_buffer_weights"))
def inverse_dynamics_forward(obs1, obs2, prepared, *, action_size,
                             tile_b=4096, single_buffer_weights=True):
    """obs1, obs2: [B, observation_size] f32 -> [B, action_size] f32.

    `prepared` must come from `prepare_params` (bf16 weights, W3 split and
    zero-padded to a lane-dense action dim).
    """
    w1, b1 = prepared["w1"], prepared["b1"]
    w2, b2 = prepared["w2"], prepared["b2"]
    w3a, w3b, b3 = prepared["w3a"], prepared["w3b"], prepared["b3"]

    B, obs = obs1.shape
    H = w1.shape[1]
    a_pad = w3a.shape[1]                       # lane-dense (multiple of 128)

    # bf16 at the HBM boundary + one stacked stream for both observations.
    obs12 = jnp.stack([obs1.astype(jnp.bfloat16), obs2.astype(jnp.bfloat16)])

    # Pad batch to a multiple of 8 so every batch tile is sublane-aligned
    # (keeps the in-kernel (2, tb, obs) -> (2*tb, obs) reshape a layout no-op).
    b_pad = ((B + 7) // 8) * 8
    if b_pad != B:
        obs12 = jnp.pad(obs12, ((0, 0), (0, b_pad - B), (0, 0)))

    tb = min(tile_b, b_pad)
    grid = (pl.cdiv(b_pad, tb),)

    in_spec = pl.BlockSpec((2, tb, obs), lambda i: (0, i, 0))
    out_spec = pl.BlockSpec((tb, a_pad), lambda i: (i, 0))

    def const_spec(shape):
        # Weights/biases never change across grid steps; single-buffer them so
        # they occupy VMEM once (matters for v7x's 64 MiB per-TC VMEM).
        if single_buffer_weights:
            return pl.BlockSpec(shape, lambda i: (0, 0),
                                pipeline_mode=pl.Buffered(1))
        return pl.BlockSpec(shape, lambda i: (0, 0))

    # --- VMEM budget (generation-aware cap) -------------------------------
    n_wbuf = 1 if single_buffer_weights else 2
    weight_vmem = n_wbuf * ((obs * H + H * H + 2 * H * a_pad) * 2
                            + (2 * H + a_pad) * 4)
    in_buf = 2 * tb * obs * 2                    # one bf16 input buffer
    out_buf = tb * a_pad * 4                     # one f32 output buffer
    live_f32 = 2 * (2 * tb) * H * 4              # in-kernel f32 intermediates
    needed = 2 * in_buf + 2 * out_buf + weight_vmem + live_f32

    try:
        vmem_cap = pltpu.get_tpu_info().vmem_capacity_bytes
    except Exception:
        vmem_cap = 64 * 2**20                    # conservative: assume v7x-like
    hard_cap = 40 * 2**20 if vmem_cap <= 64 * 2**20 else 64 * 2**20
    vmem_limit = int(min(hard_cap, max(2 * needed, 16 * 2**20)))

    # --- Cost estimate (bf16 byte counts) ----------------------------------
    flops = (2 * (2 * b_pad) * obs * H          # layer 1 (both encoders fused)
             + 2 * (2 * b_pad) * H * H          # layer 2
             + 4 * b_pad * H * a_pad)           # split action-predictor matmuls
    bytes_accessed = (2 * b_pad * obs * 2       # stacked bf16 inputs
                      + b_pad * a_pad * 4       # f32 output
                      + (obs * H + H * H + 2 * H * a_pad) * 2
                      + (2 * H + a_pad) * 4)

    out_padded = pl.pallas_call(
        idm_kernel,
        out_shape=jax.ShapeDtypeStruct((b_pad, a_pad), jnp.float32),
        grid=grid,
        in_specs=[
            in_spec,                    # stacked obs (streamed)
            const_spec(w1.shape),       # w1  (VMEM-resident, single buffer)
            const_spec(b1.shape),       # b1
            const_spec(w2.shape),       # w2
            const_spec(b2.shape),       # b2
            const_spec(w3a.shape),      # w3a
            const_spec(w3b.shape),      # w3b
            const_spec(b3.shape),       # b3
        ],
        out_specs=out_spec,
        compiler_params=pltpu.CompilerParams(
            dimension_semantics=("parallel",),
            vmem_limit_bytes=vmem_limit,
        ),
        cost_estimate=pl.CostEstimate(
            flops=flops, bytes_accessed=bytes_accessed, transcendentals=0),
    )(obs12, w1, b1, w2, b2, w3a, w3b, b3)

    return out_padded[:B, :action_size]


# ---------------------------------------------------------------------------
# Parameter construction
# ---------------------------------------------------------------------------
def init_params(key, observation_size, action_size, hidden_size):
    """f32 params mimicking nn.Linear init (uniform +/- 1/sqrt(fan_in)).

    Weights are stored transposed relative to torch ([in, out]) so the model
    computes x @ W.  W3 is the full [2H, A] action-predictor weight.
    """
    k1, k2, k3, k4, k5, k6 = jax.random.split(key, 6)
    lim1 = 1.0 / jnp.sqrt(jnp.float32(observation_size))
    lim2 = 1.0 / jnp.sqrt(jnp.float32(hidden_size))
    lim3 = 1.0 / jnp.sqrt(jnp.float32(2 * hidden_size))
    return {
        "w1": jax.random.uniform(k1, (observation_size, hidden_size), jnp.float32, -lim1, lim1),
        "b1": jax.random.uniform(k2, (1, hidden_size), jnp.float32, -lim1, lim1),
        "w2": jax.random.uniform(k3, (hidden_size, hidden_size), jnp.float32, -lim2, lim2),
        "b2": jax.random.uniform(k4, (1, hidden_size), jnp.float32, -lim2, lim2),
        "w3": jax.random.uniform(k5, (2 * hidden_size, action_size), jnp.float32, -lim3, lim3),
        "b3": jax.random.uniform(k6, (1, action_size), jnp.float32, -lim3, lim3),
    }


def prepare_params(params, *, lane=128):
    """One-time, outside-jit prep: bf16 weights, W3 split + zero-padded to a
    lane-dense action dim (multiple of 128).  Biases stay f32 (added in f32)."""
    H = params["w1"].shape[1]
    A = params["b3"].shape[1]
    a_pad = lane * ((A + lane - 1) // lane)
    pad = ((0, 0), (0, a_pad - A))
    w3 = params["w3"]
    return {
        "w1": params["w1"].astype(jnp.bfloat16),
        "b1": params["b1"].astype(jnp.float32),
        "w2": params["w2"].astype(jnp.bfloat16),
        "b2": params["b2"].astype(jnp.float32),
        "w3a": jnp.pad(w3[:H], pad).astype(jnp.bfloat16),
        "w3b": jnp.pad(w3[H:], pad).astype(jnp.bfloat16),
        "b3": jnp.pad(params["b3"], pad).astype(jnp.float32),
    }


def inverse_dynamics_ref(obs1, obs2, params):
    """Pure-JAX f32 reference matching the PyTorch forward exactly."""
    def encode(x):
        h = jnp.maximum(x @ params["w1"] + params["b1"], 0.0)
        return jnp.maximum(h @ params["w2"] + params["b2"], 0.0)

    combined = jnp.concatenate([encode(obs1), encode(obs2)], axis=1)
    return combined @ params["w3"] + params["b3"]


# ---------------------------------------------------------------------------
if __name__ == "__main__":
    batch = 2
    observation_size = 16
    action_size = 4
    hidden_size = 32

    key = jax.random.PRNGKey(0)
    k_o1, k_o2, k_par = jax.random.split(key, 3)

    obs1 = jax.random.normal(k_o1, (batch, observation_size), jnp.float32)
    obs2 = jax.random.normal(k_o2, (batch, observation_size), jnp.float32)
    raw_params = init_params(k_par, observation_size, action_size, hidden_size)
    prepared = prepare_params(raw_params)

    try:
        out = inverse_dynamics_forward(obs1, obs2, prepared,
                                       action_size=action_size)
    except Exception:
        # Fallback for jax versions where pl.Buffered(1) single-buffering of
        # the constant weight specs is unavailable.
        out = inverse_dynamics_forward(obs1, obs2, prepared,
                                       action_size=action_size,
                                       single_buffer_weights=False)
    out = jax.block_until_ready(out)

    ref = inverse_dynamics_ref(obs1, obs2, raw_params)
    assert out.shape == (batch, action_size), out.shape
    # Kernel uses bf16 MXU inputs with f32 accumulation -> loosened tolerance
    # vs the pure-f32 reference.
    assert jnp.allclose(out, ref, atol=5e-2, rtol=5e-2), (out, ref)

    print("KERNEL_OK")
</pallas_src>

<mosaic_0001>
module attributes {stable_mosaic.version = 11 : i64} {
  func.func @idm_kernel(%arg0: i32, %arg1: memref<2x8x16xbf16, #tpu.memory_space<vmem>>, %arg2: memref<16x32xbf16, #tpu.memory_space<vmem>>, %arg3: memref<1x32xf32, #tpu.memory_space<vmem>>, %arg4: memref<32x32xbf16, #tpu.memory_space<vmem>>, %arg5: memref<1x32xf32, #tpu.memory_space<vmem>>, %arg6: memref<32x128xbf16, #tpu.memory_space<vmem>>, %arg7: memref<32x128xbf16, #tpu.memory_space<vmem>>, %arg8: memref<1x128xf32, #tpu.memory_space<vmem>>, %arg9: memref<8x128xf32, #tpu.memory_space<vmem>>) attributes {dimension_semantics = [#tpu.dimension_semantics<parallel>], iteration_bounds = array<i64: 1>, scalar_prefetch = 0 : i64, scratch_operands = 0 : i64, tpu.core_type = #tpu.core_type<tc>, window_params = [{transform_indices = @transform_0, window_bounds = array<i64: 2, 8, 16>}, {pipeline_mode = #tpu.pipeline_mode<synchronous>, transform_indices = @transform_1, window_bounds = array<i64: 16, 32>}, {pipeline_mode = #tpu.pipeline_mode<synchronous>, transform_indices = @transform_2, window_bounds = array<i64: 1, 32>}, {pipeline_mode = #tpu.pipeline_mode<synchronous>, transform_indices = @transform_3, window_bounds = array<i64: 32, 32>}, {pipeline_mode = #tpu.pipeline_mode<synchronous>, transform_indices = @transform_4, window_bounds = array<i64: 1, 32>}, {pipeline_mode = #tpu.pipeline_mode<synchronous>, transform_indices = @transform_5, window_bounds = array<i64: 32, 128>}, {pipeline_mode = #tpu.pipeline_mode<synchronous>, transform_indices = @transform_6, window_bounds = array<i64: 32, 128>}, {pipeline_mode = #tpu.pipeline_mode<synchronous>, transform_indices = @transform_7, window_bounds = array<i64: 1, 128>}, {transform_indices = @transform_8, window_bounds = array<i64: 8, 128>}]} {
    %c0 = arith.constant 0 : index
    %c0_0 = arith.constant 0 : index
    %c0_1 = arith.constant 0 : index
    %0 = vector.load %arg1[%c0, %c0_0, %c0_1] : memref<2x8x16xbf16, #tpu.memory_space<vmem>>, vector<2x8x16xbf16>
    %1 = vector.shape_cast %0 : vector<2x8x16xbf16> to vector<16x16xbf16>
    %c0_2 = arith.constant 0 : index
    %c0_3 = arith.constant 0 : index
    %2 = vector.load %arg2[%c0_2, %c0_3] : memref<16x32xbf16, #tpu.memory_space<vmem>>, vector<16x32xbf16>
    %cst = arith.constant dense<0.000000e+00> : vector<16x32xf32>
    %3 = tpu.matmul %1, %2, %cst {dimension_numbers = #tpu.dot_dimension_numbers<[1], [0], [0], [1], [0, 0, 1, 1], [], []>} : vector<16x16xbf16>, vector<16x32xbf16>, vector<16x32xf32> -> vector<16x32xf32>
    %c0_4 = arith.constant 0 : index
    %c0_5 = arith.constant 0 : index
    %4 = vector.load %arg3[%c0_4, %c0_5] : memref<1x32xf32, #tpu.memory_space<vmem>>, vector<1x32xf32>
    %5 = vector.broadcast %4 : vector<1x32xf32> to vector<16x32xf32>
    %6 = arith.addf %3, %5 : vector<16x32xf32>
    %cst_6 = arith.constant 0.000000e+00 : f32
    %7 = vector.broadcast %cst_6 : f32 to vector<16x32xf32>
    %8 = arith.maximumf %6, %7 : vector<16x32xf32>
    %9 = arith.truncf %8 : vector<16x32xf32> to vector<16x32xbf16>
    %c0_7 = arith.constant 0 : index
    %c0_8 = arith.constant 0 : index
    %10 = vector.load %arg4[%c0_7, %c0_8] : memref<32x32xbf16, #tpu.memory_space<vmem>>, vector<32x32xbf16>
    %cst_9 = arith.constant dense<0.000000e+00> : vector<16x32xf32>
    %11 = tpu.matmul %9, %10, %cst_9 {dimension_numbers = #tpu.dot_dimension_numbers<[1], [0], [0], [1], [0, 0, 1, 1], [], []>} : vector<16x32xbf16>, vector<32x32xbf16>, vector<16x32xf32> -> vector<16x32xf32>
    %c0_10 = arith.constant 0 : index
    %c0_11 = arith.constant 0 : index
    %12 = vector.load %arg5[%c0_10, %c0_11] : memref<1x32xf32, #tpu.memory_space<vmem>>, vector<1x32xf32>
    %13 = vector.broadcast %12 : vector<1x32xf32> to vector<16x32xf32>
    %14 = arith.addf %11, %13 : vector<16x32xf32>
    %cst_12 = arith.constant 0.000000e+00 : f32
    %15 = vector.broadcast %cst_12 : f32 to vector<16x32xf32>
    %16 = arith.maximumf %14, %15 : vector<16x32xf32>
    %17 = arith.truncf %16 : vector<16x32xf32> to vector<16x32xbf16>
    %18 = vector.extract_strided_slice %17 {offsets = [0, 0], sizes = [8, 32], strides = [1, 1]} : vector<16x32xbf16> to vector<8x32xbf16>
    %c0_13 = arith.constant 0 : index
    %c0_14 = arith.constant 0 : index
    %19 = vector.load %arg6[%c0_13, %c0_14] : memref<32x128xbf16, #tpu.memory_space<vmem>>, vector<32x128xbf16>
    %cst_15 = arith.constant dense<0.000000e+00> : vector<8x128xf32>
    %20 = tpu.matmul %18, %19, %cst_15 {dimension_numbers = #tpu.dot_dimension_numbers<[1], [0], [0], [1], [0, 0, 1, 1], [], []>} : vector<8x32xbf16>, vector<32x128xbf16>, vector<8x128xf32> -> vector<8x128xf32>
    %21 = vector.extract_strided_slice %17 {offsets = [8, 0], sizes = [8, 32], strides = [1, 1]} : vector<16x32xbf16> to vector<8x32xbf16>
    %c0_16 = arith.constant 0 : index
    %c0_17 = arith.constant 0 : index
    %22 = vector.load %arg7[%c0_16, %c0_17] : memref<32x128xbf16, #tpu.memory_space<vmem>>, vector<32x128xbf16>
    %cst_18 = arith.constant dense<0.000000e+00> : vector<8x128xf32>
    %23 = tpu.matmul %21, %22, %cst_18 {dimension_numbers = #tpu.dot_dimension_numbers<[1], [0], [0], [1], [0, 0, 1, 1], [], []>} : vector<8x32xbf16>, vector<32x128xbf16>, vector<8x128xf32> -> vector<8x128xf32>
    %24 = arith.addf %20, %23 : vector<8x128xf32>
    %c0_19 = arith.constant 0 : index
    %c0_20 = arith.constant 0 : index
    %25 = vector.load %arg8[%c0_19, %c0_20] : memref<1x128xf32, #tpu.memory_space<vmem>>, vector<1x128xf32>
    %26 = vector.broadcast %25 : vector<1x128xf32> to vector<8x128xf32>
    %27 = arith.addf %24, %26 : vector<8x128xf32>
    %c0_21 = arith.constant 0 : index
    %c0_22 = arith.constant 0 : index
    %28 = vector.load %arg9[%c0_21, %c0_22] : memref<8x128xf32, #tpu.memory_space<vmem>>, vector<8x128xf32>
    tpu.vector_store %arg9[%c0_21, %c0_22], %27 {strides = array<i32>} : memref<8x128xf32, #tpu.memory_space<vmem>>, vector<8x128xf32>,
    return
  }
  func.func @transform_0(%arg0: i32) -> (i32, i32, i32) {
    %c0_i32 = arith.constant 0 : i32
    %c0_i32_0 = arith.constant 0 : i32
    %c0_i32_1 = arith.constant 0 : i32
    return %c0_i32, %arg0, %c0_i32_0 : i32, i32, i32
  }
  func.func @transform_1(%arg0: i32) -> (i32, i32) {
    %c0_i32 = arith.constant 0 : i32
    %c0_i32_0 = arith.constant 0 : i32
    %c0_i32_1 = arith.constant 0 : i32
    return %c0_i32, %c0_i32_0 : i32, i32
  }
  func.func @transform_2(%arg0: i32) -> (i32, i32) {
    %c0_i32 = arith.constant 0 : i32
    %c0_i32_0 = arith.constant 0 : i32
    %c0_i32_1 = arith.constant 0 : i32
    return %c0_i32, %c0_i32_0 : i32, i32
  }
  func.func @transform_3(%arg0: i32) -> (i32, i32) {
    %c0_i32 = arith.constant 0 : i32
    %c0_i32_0 = arith.constant 0 : i32
    %c0_i32_1 = arith.constant 0 : i32
    return %c0_i32, %c0_i32_0 : i32, i32
  }
  func.func @transform_4(%arg0: i32) -> (i32, i32) {
    %c0_i32 = arith.constant 0 : i32
    %c0_i32_0 = arith.constant 0 : i32
    %c0_i32_1 = arith.constant 0 : i32
    return %c0_i32, %c0_i32_0 : i32, i32
  }
  func.func @transform_5(%arg0: i32) -> (i32, i32) {
    %c0_i32 = arith.constant 0 : i32
    %c0_i32_0 = arith.constant 0 : i32
    %c0_i32_1 = arith.constant 0 : i32
    return %c0_i32, %c0_i32_0 : i32, i32
  }
  func.func @transform_6(%arg0: i32) -> (i32, i32) {
    %c0_i32 = arith.constant 0 : i32
    %c0_i32_0 = arith.constant 0 : i32
    %c0_i32_1 = arith.constant 0 : i32
    return %c0_i32, %c0_i32_0 : i32, i32
  }
  func.func @transform_7(%arg0: i32) -> (i32, i32) {
    %c0_i32 = arith.constant 0 : i32
    %c0_i32_0 = arith.constant 0 : i32
    %c0_i32_1 = arith.constant 0 : i32
    return %c0_i32, %c0_i32_0 : i32, i32
  }
  func.func @transform_8(%arg0: i32) -> (i32, i32) {
    %c0_i32 = arith.constant 0 : i32
    %c0_i32_0 = arith.constant 0 : i32
    return %arg0, %c0_i32 : i32, i32
  }
}

module attributes {stable_mosaic.version = 11 : i64} {
  func.func @idm_kernel(%arg0: i32, %arg1: memref<2x8x16xbf16, #tpu.memory_space<vmem>>, %arg2: memref<16x32xbf16, #tpu.memory_space<vmem>>, %arg3: memref<1x32xf32, #tpu.memory_space<vmem>>, %arg4: memref<32x32xbf16, #tpu.memory_space<vmem>>, %arg5: memref<1x32xf32, #tpu.memory_space<vmem>>, %arg6: memref<32x128xbf16, #tpu.memory_space<vmem>>, %arg7: memref<32x128xbf16, #tpu.memory_space<vmem>>, %arg8: memref<1x128xf32, #tpu.memory_space<vmem>>, %arg9: memref<8x128xf32, #tpu.memory_space<vmem>>) attributes {dimension_semantics = [#tpu.dimension_semantics<parallel>], iteration_bounds = array<i64: 1>, scalar_prefetch = 0 : i64, scratch_operands = 0 : i64, tpu.core_type = #tpu.core_type<tc>, window_params = [{transform_indices = @transform_0, window_bounds = array<i64: 2, 8, 16>}, {pipeline_mode = #tpu.pipeline_mode<synchronous>, transform_indices = @transform_1, window_bounds = array<i64: 16, 32>}, {pipeline_mode = #tpu.pipeline_mode<synchronous>, transform_indices = @transform_2, window_bounds = array<i64: 1, 32>}, {pipeline_mode = #tpu.pipeline_mode<synchronous>, transform_indices = @transform_3, window_bounds = array<i64: 32, 32>}, {pipeline_mode = #tpu.pipeline_mode<synchronous>, transform_indices = @transform_4, window_bounds = array<i64: 1, 32>}, {pipeline_mode = #tpu.pipeline_mode<synchronous>, transform_indices = @transform_5, window_bounds = array<i64: 32, 128>}, {pipeline_mode = #tpu.pipeline_mode<synchronous>, transform_indices = @transform_6, window_bounds = array<i64: 32, 128>}, {pipeline_mode = #tpu.pipeline_mode<synchronous>, transform_indices = @transform_7, window_bounds = array<i64: 1, 128>}, {transform_indices = @transform_8, window_bounds = array<i64: 8, 128>}]} {
    %c0 = arith.constant 0 : index
    %c0_0 = arith.constant 0 : index
    %c0_1 = arith.constant 0 : index
    %0 = vector.load %arg1[%c0, %c0_0, %c0_1] : memref<2x8x16xbf16, #tpu.memory_space<vmem>>, vector<2x8x16xbf16>
    %1 = vector.shape_cast %0 : vector<2x8x16xbf16> to vector<16x16xbf16>
    %c0_2 = arith.constant 0 : index
    %c0_3 = arith.constant 0 : index
    %2 = vector.load %arg2[%c0_2, %c0_3] : memref<16x32xbf16, #tpu.memory_space<vmem>>, vector<16x32xbf16>
    %cst = arith.constant dense<0.000000e+00> : vector<16x32xf32>
    %3 = tpu.matmul %1, %2, %cst {dimension_numbers = #tpu.dot_dimension_numbers<[1], [0], [0], [1], [0, 0, 1, 1], [], []>} : vector<16x16xbf16>, vector<16x32xbf16>, vector<16x32xf32> -> vector<16x32xf32>
    %c0_4 = arith.constant 0 : index
    %c0_5 = arith.constant 0 : index
    %4 = vector.load %arg3[%c0_4, %c0_5] : memref<1x32xf32, #tpu.memory_space<vmem>>, vector<1x32xf32>
    %5 = vector.broadcast %4 : vector<1x32xf32> to vector<16x32xf32>
    %6 = arith.addf %3, %5 : vector<16x32xf32>
    %cst_6 = arith.constant 0.000000e+00 : f32
    %7 = vector.broadcast %cst_6 : f32 to vector<16x32xf32>
    %8 = arith.maximumf %6, %7 : vector<16x32xf32>
    %9 = arith.truncf %8 : vector<16x32xf32> to vector<16x32xbf16>
    %c0_7 = arith.constant 0 : index
    %c0_8 = arith.constant 0 : index
    %10 = vector.load %arg4[%c0_7, %c0_8] : memref<32x32xbf16, #tpu.memory_space<vmem>>, vector<32x32xbf16>
    %cst_9 = arith.constant dense<0.000000e+00> : vector<16x32xf32>
    %11 = tpu.matmul %9, %10, %cst_9 {dimension_numbers = #tpu.dot_dimension_numbers<[1], [0], [0], [1], [0, 0, 1, 1], [], []>} : vector<16x32xbf16>, vector<32x32xbf16>, vector<16x32xf32> -> vector<16x32xf32>
    %c0_10 = arith.constant 0 : index
    %c0_11 = arith.constant 0 : index
    %12 = vector.load %arg5[%c0_10, %c0_11] : memref<1x32xf32, #tpu.memory_space<vmem>>, vector<1x32xf32>
    %13 = vector.broadcast %12 : vector<1x32xf32> to vector<16x32xf32>
    %14 = arith.addf %11, %13 : vector<16x32xf32>
    %cst_12 = arith.constant 0.000000e+00 : f32
    %15 = vector.broadcast %cst_12 : f32 to vector<16x32xf32>
    %16 = arith.maximumf %14, %15 : vector<16x32xf32>
    %17 = arith.truncf %16 : vector<16x32xf32> to vector<16x32xbf16>
    %18 = vector.extract_strided_slice %17 {offsets = [0, 0], sizes = [8, 32], strides = [1, 1]} : vector<16x32xbf16> to vector<8x32xbf16>
    %c0_13 = arith.constant 0 : index
    %c0_14 = arith.constant 0 : index
    %19 = vector.load %arg6[%c0_13, %c0_14] : memref<32x128xbf16, #tpu.memory_space<vmem>>, vector<32x128xbf16>
    %cst_15 = arith.constant dense<0.000000e+00> : vector<8x128xf32>
    %20 = tpu.matmul %18, %19, %cst_15 {dimension_numbers = #tpu.dot_dimension_numbers<[1], [0], [0], [1], [0, 0, 1, 1], [], []>} : vector<8x32xbf16>, vector<32x128xbf16>, vector<8x128xf32> -> vector<8x128xf32>
    %21 = vector.extract_strided_slice %17 {offsets = [8, 0], sizes = [8, 32], strides = [1, 1]} : vector<16x32xbf16> to vector<8x32xbf16>
    %c0_16 = arith.constant 0 : index
    %c0_17 = arith.constant 0 : index
    %22 = vector.load %arg7[%c0_16, %c0_17] : memref<32x128xbf16, #tpu.memory_space<vmem>>, vector<32x128xbf16>
    %cst_18 = arith.constant dense<0.000000e+00> : vector<8x128xf32>
    %23 = tpu.matmul %21, %22, %cst_18 {dimension_numbers = #tpu.dot_dimension_numbers<[1], [0], [0], [1], [0, 0, 1, 1], [], []>} : vector<8x32xbf16>, vector<32x128xbf16>, vector<8x128xf32> -> vector<8x128xf32>
    %24 = arith.addf %20, %23 : vector<8x128xf32>
    %c0_19 = arith.constant 0 : index
    %c0_20 = arith.constant 0 : index
    %25 = vector.load %arg8[%c0_19, %c0_20] : memref<1x128xf32, #tpu.memory_space<vmem>>, vector<1x128xf32>
    %26 = vector.broadcast %25 : vector<1x128xf32> to vector<8x128xf32>
    %27 = arith.addf %24, %26 : vector<8x128xf32>
    %c0_21 = arith.constant 0 : index
    %c0_22 = arith.constant 0 : index
    %28 = vector.load %arg9[%c0_21, %c0_22] : memref<8x128xf32, #tpu.memory_space<vmem>>, vector<8x128xf32>
    tpu.vector_store %arg9[%c0_21, %c0_22], %27 {strides = array<i32>} : memref<8x128xf32, #tpu.memory_space<vmem>>, vector<8x128xf32>,
    return
  }
  func.func @transform_0(%arg0: i32) -> (i32, i32, i32) {
    %c0_i32 = arith.constant 0 : i32
    %c0_i32_0 = arith.constant 0 : i32
    %c0_i32_1 = arith.constant 0 : i32
    return %c0_i32, %arg0, %c0_i32_0 : i32, i32, i32
  }
  func.func @transform_1(%arg0: i32) -> (i32, i32) {
    %c0_i32 = arith.constant 0 : i32
    %c0_i32_0 = arith.constant 0 : i32
    %c0_i32_1 = arith.constant 0 : i32
    return %c0_i32, %c0_i32_0 : i32, i32
  }
  func.func @transform_2(%arg0: i32) -> (i32, i32) {
    %c0_i32 = arith.constant 0 : i32
    %c0_i32_0 = arith.constant 0 : i32
    %c0_i32_1 = arith.constant 0 : i32
    return %c0_i32, %c0_i32_0 : i32, i32
  }
  func.func @transform_3(%arg0: i32) -> (i32, i32) {
    %c0_i32 = arith.constant 0 : i32
    %c0_i32_0 = arith.constant 0 : i32
    %c0_i32_1 = arith.constant 0 : i32
    return %c0_i32, %c0_i32_0 : i32, i32
  }
  func.func @transform_4(%arg0: i32) -> (i32, i32) {
    %c0_i32 = arith.constant 0 : i32
    %c0_i32_0 = arith.constant 0 : i32
    %c0_i32_1 = arith.constant 0 : i32
    return %c0_i32, %c0_i32_0 : i32, i32
  }
  func.func @transform_5(%arg0: i32) -> (i32, i32) {
    %c0_i32 = arith.constant 0 : i32
    %c0_i32_0 = arith.constant 0 : i32
    %c0_i32_1 = arith.constant 0 : i32
    return %c0_i32, %c0_i32_0 : i32, i32
  }
  func.func @transform_6(%arg0: i32) -> (i32, i32) {
    %c0_i32 = arith.constant 0 : i32
    %c0_i32_0 = arith.constant 0 : i32
    %c0_i32_1 = arith.constant 0 : i32
    return %c0_i32, %c0_i32_0 : i32, i32
  }
  func.func @transform_7(%arg0: i32) -> (i32, i32) {
    %c0_i32 = arith.constant 0 : i32
    %c0_i32_0 = arith.constant 0 : i32
    %c0_i32_1 = arith.constant 0 : i32
    return %c0_i32, %c0_i32_0 : i32, i32
  }
  func.func @transform_8(%arg0: i32) -> (i32, i32) {
    %c0_i32 = arith.constant 0 : i32
    %c0_i32_0 = arith.constant 0 : i32
    return %arg0, %c0_i32 : i32, i32
  }
}

</mosaic_0001>

<bundles_post_ra>
// kernel: inverse_dynamics_forward.1
= control target key start
LH: loop header
LB: loop body
LE: loop exit
PB: predicated region body
PF: predicated region fallthrough
CT: control target
= control target key end

     0   :  { %13 = vsyncpa [#allocation3], 0  ;;  %s446_s0 = inlined_call_operand.vmem [shape: bf16[2,8,16], index: 0, kind: input, shape index: {}]   ;;  %s447_s1 = inlined_call_operand.hbm [shape: bf16[16,32], index: 1, kind: input, shape index: {}]   ;;  %s448_s2 = inlined_call_operand.vmem [shape: f32[1,32], index: 2, kind: input, shape index: {}]   ;;  %s449_s3 = inlined_call_operand.vmem [shape: bf16[32,32], index: 3, kind: input, shape index: {}]   ;;  %s450_s4 = inlined_call_operand.vmem [shape: f32[1,32], index: 4, kind: input, shape index: {}]   ;;  %s451_s5 = inlined_call_operand.hbm [shape: bf16[32,128], index: 5, kind: input, shape index: {}]   ;;  %s452_s6 = inlined_call_operand.hbm [shape: bf16[32,128], index: 6, kind: input, shape index: {}]   ;;  %s453_s7 = inlined_call_operand.vmem [shape: f32[1,128], index: 7, kind: input, shape index: {}]   ;;  %s454_s8 = inlined_call_operand.vmem [shape: f32[8,128], index: 8, kind: output, shape index: {}]  }
   0x1   :  { %14 = vsyncpa [#allocation5], 0  ;;  %s40_s29 = sshll.u32 %s451_s5, 4  ;;  %s363_s30 = smov [#allocation4]   ;;  %s41_s29 = int_to_ptr.hbm [resolvable:$true] %s40_s29 }
   0x2   :  { %s42_s9 = sshll.u32 %s363_s30, 4  ;;  %s21_s12 = sshll.u32 %s447_s1, 4  ;;  %s43_s9 = int_to_ptr.vmem [resolvable:$true] %s42_s9  ;;  %s22_s12 = int_to_ptr.hbm [resolvable:$true] %s21_s12 }
   0x3   :  { %s364_s13 = smov 64   ;;  %s365_s14 = smov 4  }
   0x4   :  { %48 = dma.hbm_to_vmem [thread:$0]  %s41_s29, 256, %s43_s9, [#allocation5], %s364_s13, %s364_s13, %s365_s14  }
   0x5   :  { %s366_s15 = smov [#allocation2]   ;;  %s53_s19 = sshll.u32 %s452_s6, 4  ;;  %s54_s19 = int_to_ptr.hbm [resolvable:$true] %s53_s19 }
   0x6   :  { %s23_s16 = sshll.u32 %s366_s15, 4  ;;  %s367_s5 = smov [#allocation6]   ;;  %s24_s16 = int_to_ptr.vmem [resolvable:$true] %s23_s16 }
   0x7   :  { %29 = dma.hbm_to_vmem [thread:$0]  %s22_s12, 128, %s24_s16, [#allocation3], %s364_s13, %s364_s13, %s365_s14  }
   0x8   :  { %s55_s20 = sshll.u32 %s367_s5, 4  ;;  %s56_s20 = int_to_ptr.vmem [resolvable:$true] %s55_s20 }
   0x9   :  { %61 = dma.hbm_to_vmem [thread:$0]  %s54_s19, 256, %s56_s20, [#allocation5], %s364_s13, %s364_s13, %s365_s14  }
   0xa   :  { %359 = dma.done.wait [#allocation3], 128  }
   0xb   :  { %360 = vsyncadd [#allocation3], 4294967168 }
   0xc   :  { %361 = dma.done.wait [#allocation5], 512  }
   0xd   :  { %362 = vsyncadd [#allocation5], 4294966784  ;;  %v272_v0 = vld [vmem:[#allocation2] sm:$0xff]  ;;  %v271_v1 = vld [vmem:[%s446_s0] sm:$0xff]  ;;  %vm96_vm0 = vcmask 130048   ;;  %vm137_vm1 = vcmask 261120  }
   0xe   :  { %107 = vmatpush.bf16.msra.mxu0 %v272_v0  ;;  %v274_v2 = vld [vmem:[%s449_s3 + $0x8] sm:$0xff]  ;;  %v273_v3 = vld [vmem:[%s449_s3] sm:$0xff]  ;;  %v275_v13 = vld [vmem:[#allocation4] sm:$0xff] }
   0xf   :  { %147 = vmatpush.bf16.msra.mxu1 %v274_v2  ;;  %v284_v5 = vld [vmem:[%s448_s2] ss:$0 sm:$0xff]  ;;  %v278_v14 = vld [vmem:[#allocation6 + $0x8] sm:$0xff]  ;;  %v277_v15 = vld [vmem:[#allocation6] sm:$0xff] }
  0x10   :  { %v276_v12 = vld [vmem:[#allocation4 + $0x8] sm:$0xff]  ;;  %188 = vmatpush.bf16.msra.mxu2 %v278_v14 }
  0x11   :  { %243 = vmatmul.msk.bf16.vlgmr.msra.gmra.mxu0 %vm96_vm0, %v271_v1  ;;  %216 = vmatpush.bf16.msra.mxu3 %v276_v12  ;;  %v285_v16 = vld [vmem:[%s450_s4] ss:$0 sm:$0xff] }
  0x12   :  { %v286_v26 = vld [vmem:[%s453_s7] ss:$0 sm:$0xff] }
  0x13   :  { %148 = vmatpush.bf16.msra.mxu1 %v273_v3 }
  0x14   :  { %189 = vmatpush.bf16.msra.mxu2 %v277_v15 }
  0x15   :  { %217 = vmatpush.bf16.msra.mxu3 %v275_v13 }
  0x8e   :  { %v109_v4 = vpop.f32.mrf.mxu0 }
  0x8f   :  { %v110_v6 = vadd.f32 %v284_v5, %v109_v4 }
  0x91   :  { %v114_v9 = vmax.f32 %v110_v6, 0.0 }
  0x96   :  { %v111_v7 = vpop.f32.mrf.mxu0 }
  0x97   :  { %v112_v8 = vadd.f32 %v284_v5, %v111_v7 }
  0x99   :  { %v115_v10 = vmax.f32 %v112_v8, 0.0 }
  0x9b   :  { %v116_v11 = vpack.c.bf16 %v115_v10, %v114_v9 }
  0x9d   :  { %252 = vmatmul.msk.bf16.vlgmr.msra.gmra.mxu1 %vm137_vm1, %v116_v11 }
 0x11a   :  { %v150_v17 = vpop.f32.mrf.mxu1 }
 0x11b   :  { %v151_v18 = vadd.f32 %v285_v16, %v150_v17 }
 0x11d   :  { %v155_v19 = vmax.f32 %v151_v18, 0.0 }
 0x11f   :  { %v157_v20 = vpack.c.bf16 %v155_v19, %v155_v19 }
 0x121   :  { %270 = vmatmul.msk.bf16.vlgmr.msra.gmra.mxu3 %vm137_vm1, %v157_v20 }
 0x122   :  { %v152_v21 = vpop.f32.mrf.mxu1 }
 0x123   :  { %v153_v22 = vadd.f32 %v285_v16, %v152_v21 }
 0x125   :  { %v156_v23 = vmax.f32 %v153_v22, 0.0 }
 0x127   :  { %v158_v24 = vpack.c.bf16 %v156_v23, %v156_v23 }
 0x129   :  { %261 = vmatmul.msk.bf16.vlgmr.msra.gmra.mxu2 %vm137_vm1, %v158_v24 }
 0x1a4   :  { %v219_v25 = vpop.f32.mrf.mxu3 }
 0x1ac   :  { %v191_v27 = vpop.f32.mrf.mxu2  ;;  %v221_v28 = vpop.f32.mrf.mxu3 }
 0x1ad   :  { %v220_v29 = vadd.f32 %v219_v25, %v191_v27 }
 0x1af   :  { %v227_v30 = vadd.f32 %v286_v26, %v220_v29 }
 0x1b1   :  { %228 = vst [vmem:[%s454_s8] sm:$0xff] %v227_v30 }
 0x1b4   :  { %v193_v31 = vpop.f32.mrf.mxu2 }
 0x1b5   :  { %233 = vsyncpa [#allocation3], 1 }
 0x1b6   :  { %234 = vsyncpa [#allocation5], 1 }

// kernel: inverse_dynamics_forward.1
= control target key start
LH: loop header
LB: loop body
LE: loop exit
PB: predicated region body
PF: predicated region fallthrough
CT: control target
= control target key end

     0   :  { %13 = vsyncpa [#allocation3], 0  ;;  %s446_s0 = inlined_call_operand.vmem [shape: bf16[2,8,16], index: 0, kind: input, shape index: {}]   ;;  %s447_s1 = inlined_call_operand.hbm [shape: bf16[16,32], index: 1, kind: input, shape index: {}]   ;;  %s448_s2 = inlined_call_operand.vmem [shape: f32[1,32], index: 2, kind: input, shape index: {}]   ;;  %s449_s3 = inlined_call_operand.vmem [shape: bf16[32,32], index: 3, kind: input, shape index: {}]   ;;  %s450_s4 = inlined_call_operand.vmem [shape: f32[1,32], index: 4, kind: input, shape index: {}]   ;;  %s451_s5 = inlined_call_operand.hbm [shape: bf16[32,128], index: 5, kind: input, shape index: {}]   ;;  %s452_s6 = inlined_call_operand.hbm [shape: bf16[32,128], index: 6, kind: input, shape index: {}]   ;;  %s453_s7 = inlined_call_operand.vmem [shape: f32[1,128], index: 7, kind: input, shape index: {}]   ;;  %s454_s8 = inlined_call_operand.vmem [shape: f32[8,128], index: 8, kind: output, shape index: {}]  }
   0x1   :  { %14 = vsyncpa [#allocation5], 0  ;;  %s40_s29 = sshll.u32 %s451_s5, 4  ;;  %s363_s30 = smov [#allocation4]   ;;  %s41_s29 = int_to_ptr.hbm [resolvable:$true] %s40_s29 }
   0x2   :  { %s42_s9 = sshll.u32 %s363_s30, 4  ;;  %s21_s12 = sshll.u32 %s447_s1, 4  ;;  %s43_s9 = int_to_ptr.vmem [resolvable:$true] %s42_s9  ;;  %s22_s12 = int_to_ptr.hbm [resolvable:$true] %s21_s12 }
   0x3   :  { %s364_s13 = smov 64   ;;  %s365_s14 = smov 4  }
   0x4   :  { %48 = dma.hbm_to_vmem [thread:$0]  %s41_s29, 256, %s43_s9, [#allocation5], %s364_s13, %s364_s13, %s365_s14  }
   0x5   :  { %s366_s15 = smov [#allocation2]   ;;  %s53_s19 = sshll.u32 %s452_s6, 4  ;;  %s54_s19 = int_to_ptr.hbm [resolvable:$true] %s53_s19 }
   0x6   :  { %s23_s16 = sshll.u32 %s366_s15, 4  ;;  %s367_s5 = smov [#allocation6]   ;;  %s24_s16 = int_to_ptr.vmem [resolvable:$true] %s23_s16 }
   0x7   :  { %29 = dma.hbm_to_vmem [thread:$0]  %s22_s12, 128, %s24_s16, [#allocation3], %s364_s13, %s364_s13, %s365_s14  }
   0x8   :  { %s55_s20 = sshll.u32 %s367_s5, 4  ;;  %s56_s20 = int_to_ptr.vmem [resolvable:$true] %s55_s20 }
   0x9   :  { %61 = dma.hbm_to_vmem [thread:$0]  %s54_s19, 256, %s56_s20, [#allocation5], %s364_s13, %s364_s13, %s365_s14  }
   0xa   :  { %359 = dma.done.wait [#allocation3], 128  }
   0xb   :  { %360 = vsyncadd [#allocation3], 4294967168 }
   0xc   :  { %361 = dma.done.wait [#allocation5], 512  }
   0xd   :  { %362 = vsyncadd [#allocation5], 4294966784  ;;  %v272_v0 = vld [vmem:[#allocation2] sm:$0xff]  ;;  %v271_v1 = vld [vmem:[%s446_s0] sm:$0xff]  ;;  %vm96_vm0 = vcmask 130048   ;;  %vm137_vm1 = vcmask 261120  }
   0xe   :  { %107 = vmatpush.bf16.msra.mxu0 %v272_v0  ;;  %v274_v2 = vld [vmem:[%s449_s3 + $0x8] sm:$0xff]  ;;  %v273_v3 = vld [vmem:[%s449_s3] sm:$0xff]  ;;  %v275_v13 = vld [vmem:[#allocation4] sm:$0xff] }
   0xf   :  { %147 = vmatpush.bf16.msra.mxu1 %v274_v2  ;;  %v284_v5 = vld [vmem:[%s448_s2] ss:$0 sm:$0xff]  ;;  %v278_v14 = vld [vmem:[#allocation6 + $0x8] sm:$0xff]  ;;  %v277_v15 = vld [vmem:[#allocation6] sm:$0xff] }
  0x10   :  { %v276_v12 = vld [vmem:[#allocation4 + $0x8] sm:$0xff]  ;;  %188 = vmatpush.bf16.msra.mxu2 %v278_v14 }
  0x11   :  { %243 = vmatmul.msk.bf16.vlgmr.msra.gmra.mxu0 %vm96_vm0, %v271_v1  ;;  %216 = vmatpush.bf16.msra.mxu3 %v276_v12  ;;  %v285_v16 = vld [vmem:[%s450_s4] ss:$0 sm:$0xff] }
  0x12   :  { %v286_v26 = vld [vmem:[%s453_s7] ss:$0 sm:$0xff] }
  0x13   :  { %148 = vmatpush.bf16.msra.mxu1 %v273_v3 }
  0x14   :  { %189 = vmatpush.bf16.msra.mxu2 %v277_v15 }
  0x15   :  { %217 = vmatpush.bf16.msra.mxu3 %v275_v13 }
  0x8e   :  { %v109_v4 = vpop.f32.mrf.mxu0 }
  0x8f   :  { %v110_v6 = vadd.f32 %v284_v5, %v109_v4 }
  0x91   :  { %v114_v9 = vmax.f32 %v110_v6, 0.0 }
  0x96   :  { %v111_v7 = vpop.f32.mrf.mxu0 }
  0x97   :  { %v112_v8 = vadd.f32 %v284_v5, %v111_v7 }
  0x99   :  { %v115_v10 = vmax.f32 %v112_v8, 0.0 }
  0x9b   :  { %v116_v11 = vpack.c.bf16 %v115_v10, %v114_v9 }
  0x9d   :  { %252 = vmatmul.msk.bf16.vlgmr.msra.gmra.mxu1 %vm137_vm1, %v116_v11 }
 0x11a   :  { %v150_v17 = vpop.f32.mrf.mxu1 }
 0x11b   :  { %v151_v18 = vadd.f32 %v285_v16, %v150_v17 }
 0x11d   :  { %v155_v19 = vmax.f32 %v151_v18, 0.0 }
 0x11f   :  { %v157_v20 = vpack.c.bf16 %v155_v19, %v155_v19 }
 0x121   :  { %270 = vmatmul.msk.bf16.vlgmr.msra.gmra.mxu3 %vm137_vm1, %v157_v20 }
 0x122   :  { %v152_v21 = vpop.f32.mrf.mxu1 }
 0x123   :  { %v153_v22 = vadd.f32 %v285_v16, %v152_v21 }
 0x125   :  { %v156_v23 = vmax.f32 %v153_v22, 0.0 }
 0x127   :  { %v158_v24 = vpack.c.bf16 %v156_v23, %v156_v23 }
 0x129   :  { %261 = vmatmul.msk.bf16.vlgmr.msra.gmra.mxu2 %vm137_vm1, %v158_v24 }
 0x1a4   :  { %v219_v25 = vpop.f32.mrf.mxu3 }
 0x1ac   :  { %v191_v27 = vpop.f32.mrf.mxu2  ;;  %v221_v28 = vpop.f32.mrf.mxu3 }
 0x1ad   :  { %v220_v29 = vadd.f32 %v219_v25, %v191_v27 }
 0x1af   :  { %v227_v30 = vadd.f32 %v286_v26, %v220_v29 }
 0x1b1   :  { %228 = vst [vmem:[%s454_s8] sm:$0xff] %v227_v30 }
 0x1b4   :  { %v193_v31 = vpop.f32.mrf.mxu2 }
 0x1b5   :  { %233 = vsyncpa [#allocation3], 1 }
 0x1b6   :  { %234 = vsyncpa [#allocation5], 1 }

</bundles_post_ra>
